<compile_context>
chip_gen: v7x
topology: tpu7x:2x2x1
jax: 0.10.0
libtpu: 0.0.40
codegen_flags: <defaults>
</compile_context>

<pallas_src>
import jax
import jax.numpy as jnp
from jax.experimental import pallas as pl
from jax.experimental.pallas import tpu as pltpu

EPS = 1e-6        # reagent.preprocessing.normalization.EPS
LANES = 128       # TPU vreg lane width
_SMALL_ELEMS = 1 << 20   # below ~1M elements, fused XLA beats a pallas_call launch


def _postprocess_kernel(x_ref, params_ref, o_ref):
    # params_ref is (2, 128): row 0 = per-lane scale, row 1 = per-lane bias
    x = x_ref[...].astype(jnp.float32)
    scale = params_ref[0:1, :]          # (1, 128) broadcast over sublanes
    bias = params_ref[1:2, :]
    y = jnp.clip(x, -1.0 + EPS, 1.0 - EPS) * scale + bias
    o_ref[...] = y.astype(o_ref.dtype)


def _default_block_rows():
    # Rows of the lane-dense (rows, 128) layout per grid step (multiples of 32 so the
    # tile is sublane-aligned for f32/bf16/int8 alike).
    #   v7x : 8192 rows (4 MiB f32 tile) -> 2x(in+out) buffers = 16 MiB < 32 MiB scoped.
    #   v6e : 2048 rows already sits at ~86%+ of the HBM roofline.
    #   v5e : 2048 rows keeps pipelined VMEM (~4 MiB) far below the 16 MiB scoped limit.
    try:
        kind = jax.devices()[0].device_kind.lower()
    except Exception:
        return 2048
    if "v7" in kind:
        return 8192
    return 2048


def _xla_postprocess(x, scale, bias):
    y = jnp.clip(x.astype(jnp.float32), -1.0 + EPS, 1.0 - EPS) * scale[None, :] + bias[None, :]
    return y.astype(x.dtype)


def _pallas_packed(x_aligned, scale, bias, pack, block_rows):
    """Lane-dense Pallas path. x_aligned: (B_main, F) with B_main % pack == 0."""
    B_main, F = x_aligned.shape
    rows = B_main // pack
    x_packed = x_aligned.reshape(rows, LANES)      # free: contiguous row-major reshape

    # per-lane params repeated to match the row-major feature packing
    scale_row = jnp.tile(scale, pack).reshape(1, LANES)
    bias_row = jnp.tile(bias, pack).reshape(1, LANES)
    params = jnp.concatenate([scale_row, bias_row], axis=0)   # (2, 128) f32

    if rows <= block_rows:
        tb = rows                      # single full-array block: legal for any row count
        grid = (1,)
    else:
        tb = block_rows                # multiple of 32 -> sublane-aligned block
        grid = (pl.cdiv(rows, tb),)    # partial last tile handled by Pallas (OOB writes dropped)

    out_packed = pl.pallas_call(
        _postprocess_kernel,
        out_shape=jax.ShapeDtypeStruct((rows, LANES), x_aligned.dtype),
        grid_spec=pl.GridSpec(
            grid=grid,
            in_specs=[
                pl.BlockSpec((tb, LANES), lambda i: (i, 0)),   # streamed batch tiles
                pl.BlockSpec((2, LANES), lambda i: (0, 0)),    # params resident
            ],
            out_specs=pl.BlockSpec((tb, LANES), lambda i: (i, 0)),
        ),
        compiler_params=pltpu.CompilerParams(
            dimension_semantics=("parallel",),  # shards batch tiles across TCs on v7x
        ),
    )(x_packed, params)

    return out_packed.reshape(B_main, F)           # free reshape back


def postprocess(x, scaling_factor, min_serving_value,
                feature_type="CONTINUOUS_ACTION", *,
                force_pallas=False, block_rows=None):
    """x: (B, F). scaling_factor, min_serving_value: (F,). Returns (B, F)."""
    if feature_type == "DO_NOT_PREPROCESS":
        return x  # identity branch

    B, F = x.shape
    scale = scaling_factor.astype(jnp.float32)
    # fold the constant (+1 - EPS) shift into a per-feature bias (one-time (F,) op)
    bias = min_serving_value.astype(jnp.float32) + (1.0 - EPS) * scale

    lane_packable = (F <= LANES) and (LANES % F == 0)
    # TODO(synk): extend the lane-dense path to F values that don't divide 128 by padding
    # the feature axis inside the packed layout instead of falling back to XLA.
    if not lane_packable or (not force_pallas and B * F < _SMALL_ELEMS):
        return _xla_postprocess(x, scale, bias)

    if block_rows is None:
        block_rows = _default_block_rows()

    pack = LANES // F                  # batch rows per 128-lane row
    B_main = (B // pack) * pack
    if B_main == 0:
        return _xla_postprocess(x, scale, bias)

    if B_main == B:
        # Aligned batch: no pad, no slice, reshapes in/out are free.
        return _pallas_packed(x, scale, bias, pack, block_rows)

    # Ragged batch: Pallas on the aligned prefix, fused XLA on the (< pack)-row tail.
    out_main = _pallas_packed(x[:B_main], scale, bias, pack, block_rows)
    out_tail = _xla_postprocess(x[B_main:], scale, bias)
    return jnp.concatenate([out_main, out_tail], axis=0)


def reference(x, scaling_factor, min_serving_value):
    clamped = jnp.clip(x, -1.0 + EPS, 1.0 - EPS)
    return (clamped + 1.0 - EPS) * scaling_factor[None, :] + min_serving_value[None, :]


if __name__ == "__main__":
    key = jax.random.PRNGKey(0)
    F = 8  # num_output_features

    # Deterministic synthetic normalization parameters (CONTINUOUS_ACTION).
    min_values = jnp.linspace(-5.0, 3.0, F, dtype=jnp.float32)
    max_values = min_values + jnp.linspace(2.0, 10.0, F, dtype=jnp.float32)
    min_serving_value = min_values
    scaling_factor = (max_values - min_values) / (2.0 * (1.0 - EPS))

    k1, k2, k3, k4, k5 = jax.random.split(key, 5)

    # 1) module prototype shape (2, 8): tiny -> fused-XLA fast path
    x_small = jax.random.normal(k1, (2, F), dtype=jnp.float32) * 1.5
    out_small = jax.block_until_ready(postprocess(x_small, scaling_factor, min_serving_value))
    assert out_small.shape == (2, F) and out_small.dtype == jnp.float32
    assert jnp.allclose(out_small, reference(x_small, scaling_factor, min_serving_value),
                        atol=1e-5, rtol=1e-5)

    # 2) ragged batch (not a multiple of the lane-pack factor): Pallas on the aligned
    #    prefix + XLA tail + concat (no full-array pad/slice)
    x_ragged = jax.random.normal(k2, (100, F), dtype=jnp.float32) * 1.5
    out_ragged = jax.block_until_ready(
        postprocess(x_ragged, scaling_factor, min_serving_value, force_pallas=True))
    assert out_ragged.shape == (100, F)
    assert jnp.allclose(out_ragged, reference(x_ragged, scaling_factor, min_serving_value),
                        atol=1e-5, rtol=1e-5)

    # 3) aligned large batch: lane-dense, multi-step grid (rows=1024, tb=512 -> grid=2)
    x_big = jax.random.normal(k3, (16384, F), dtype=jnp.float32) * 1.5
    out_big = jax.block_until_ready(
        postprocess(x_big, scaling_factor, min_serving_value,
                    force_pallas=True, block_rows=512))
    assert out_big.shape == (16384, F) and out_big.dtype == jnp.float32
    assert jnp.allclose(out_big, reference(x_big, scaling_factor, min_serving_value),
                        atol=1e-5, rtol=1e-5)

    # 4) aligned batch whose row count is NOT a multiple of the tile: exercises the
    #    pl.cdiv grid with a partial last tile (rows=1250, tb=512 -> grid=3)
    x_part = jax.random.normal(k4, (20000, F), dtype=jnp.float32) * 1.5
    out_part = jax.block_until_ready(
        postprocess(x_part, scaling_factor, min_serving_value,
                    force_pallas=True, block_rows=512))
    assert out_part.shape == (20000, F)
    assert jnp.allclose(out_part, reference(x_part, scaling_factor, min_serving_value),
                        atol=1e-5, rtol=1e-5)

    # 5) bf16 input through the Pallas path (compute in f32, store bf16)
    x_bf = (jax.random.normal(k5, (4096, F), dtype=jnp.float32) * 1.5).astype(jnp.bfloat16)
    out_bf = jax.block_until_ready(
        postprocess(x_bf, scaling_factor, min_serving_value, force_pallas=True))
    assert out_bf.shape == (4096, F) and out_bf.dtype == jnp.bfloat16
    ref_bf = reference(x_bf.astype(jnp.float32), scaling_factor, min_serving_value)
    assert jnp.allclose(out_bf.astype(jnp.float32), ref_bf, atol=0.1, rtol=0.02)

    # 6) DO_NOT_PREPROCESS branch is identity
    out_id = postprocess(x_small, scaling_factor, min_serving_value,
                         feature_type="DO_NOT_PREPROCESS")
    assert jnp.array_equal(out_id, x_small)

    print("KERNEL_OK")
</pallas_src>

<mosaic_0001>
module attributes {stable_mosaic.version = 11 : i64} {
  func.func @_postprocess_kernel(%arg0: i32, %arg1: memref<6x128xf32, #tpu.memory_space<vmem>>, %arg2: memref<2x128xf32, #tpu.memory_space<vmem>>, %arg3: memref<6x128xf32, #tpu.memory_space<vmem>>) attributes {dimension_semantics = [#tpu.dimension_semantics<parallel>], iteration_bounds = array<i64: 1>, scalar_prefetch = 0 : i64, scratch_operands = 0 : i64, tpu.core_type = #tpu.core_type<tc>, window_params = [{transform_indices = @transform_0, window_bounds = array<i64: 6, 128>}, {pipeline_mode = #tpu.pipeline_mode<synchronous>, transform_indices = @transform_1, window_bounds = array<i64: 2, 128>}, {transform_indices = @transform_2, window_bounds = array<i64: 6, 128>}]} {
    %c0 = arith.constant 0 : index
    %c0_0 = arith.constant 0 : index
    %0 = vector.load %arg1[%c0, %c0_0] : memref<6x128xf32, #tpu.memory_space<vmem>>, vector<6x128xf32>
    %c0_1 = arith.constant 0 : index
    %c0_2 = arith.constant 0 : index
    %1 = vector.load %arg2[%c0_1, %c0_2] : memref<2x128xf32, #tpu.memory_space<vmem>>, vector<1x128xf32>
    %c1 = arith.constant 1 : index
    %c0_3 = arith.constant 0 : index
    %2 = vector.load %arg2[%c1, %c0_3] : memref<2x128xf32, #tpu.memory_space<vmem>>, vector<1x128xf32>
    %cst = arith.constant -0.999998986 : f32
    %cst_4 = arith.constant 0.999998986 : f32
    %3 = vector.broadcast %cst : f32 to vector<6x128xf32>
    %4 = arith.maximumf %3, %0 : vector<6x128xf32>
    %5 = vector.broadcast %cst_4 : f32 to vector<6x128xf32>
    %6 = arith.minimumf %5, %4 : vector<6x128xf32>
    %7 = vector.broadcast %1 : vector<1x128xf32> to vector<6x128xf32>
    %8 = arith.mulf %6, %7 : vector<6x128xf32>
    %9 = vector.broadcast %2 : vector<1x128xf32> to vector<6x128xf32>
    %10 = arith.addf %8, %9 : vector<6x128xf32>
    %c0_5 = arith.constant 0 : index
    %c0_6 = arith.constant 0 : index
    %11 = vector.load %arg3[%c0_5, %c0_6] : memref<6x128xf32, #tpu.memory_space<vmem>>, vector<6x128xf32>
    tpu.vector_store %arg3[%c0_5, %c0_6], %10 {strides = array<i32>} : memref<6x128xf32, #tpu.memory_space<vmem>>, vector<6x128xf32>,
    return
  }
  func.func @transform_0(%arg0: i32) -> (i32, i32) {
    %c0_i32 = arith.constant 0 : i32
    %c0_i32_0 = arith.constant 0 : i32
    return %arg0, %c0_i32 : i32, i32
  }
  func.func @transform_1(%arg0: i32) -> (i32, i32) {
    %c0_i32 = arith.constant 0 : i32
    %c0_i32_0 = arith.constant 0 : i32
    %c0_i32_1 = arith.constant 0 : i32
    return %c0_i32, %c0_i32_0 : i32, i32
  }
  func.func @transform_2(%arg0: i32) -> (i32, i32) {
    %c0_i32 = arith.constant 0 : i32
    %c0_i32_0 = arith.constant 0 : i32
    return %arg0, %c0_i32 : i32, i32
  }
}

</mosaic_0001>

<bundles_post_ra>
// kernel: tpu_custom_call.1
= control target key start
LH: loop header
LB: loop body
LE: loop exit
PB: predicated region body
PF: predicated region fallthrough
CT: control target
= control target key end

     0   :  { %7 = vsyncpa [#allocation3], 0  ;;  %s155_s0 = inlined_call_operand.hbm [shape: f32[6,128], index: 0, kind: input, shape index: {}]   ;;  %s156_s1 = inlined_call_operand.vmem [shape: f32[2,128], index: 1, kind: input, shape index: {}]   ;;  %s157_s2 = inlined_call_operand.hbm [shape: f32[6,128], index: 2, kind: output, shape index: {}]  }
   0x1   :  { %8 = vsyncpa [#allocation4], 0  ;;  %s108_s9 = smov [#allocation2]   ;;  %s60_s13 = scalar_lea.hbm %s155_s0, 128 }
   0x2   :  { %s15_s10 = sshll.u32 %s108_s9, 4  ;;  %p61_p0 = scmp.ne.s32.totalorder %s155_s0, %s60_s13  ;;  %s16_s10 = int_to_ptr.vmem [resolvable:$true] %s15_s10 }
   0x3   :  { %p64_p1 = scmp.lt.u32.totalorder %s60_s13, %s155_s0 }
   0x5   :  { %p66_p2 = pnand %p64_p1, %p61_p0 }
   0x7   :  { %69 = shalt.err (!%p66_p2)
}
   0x8   :  { %s70_s18 = scalar_lea.vmem %s16_s10, 128  ;;  %p75_p4 = scmp.lt.s32.totalorder %s16_s10, %s16_s10 }
   0x9   :  { %p71_p3 = scmp.ne.s32.totalorder %s16_s10, %s70_s18  ;;  %p76_p5 = scmp.lt.s32.totalorder %s70_s18, %s70_s18 }
   0xb   :  { %p77_p6 = por %p76_p5, %p75_p4 }
   0xd   :  { %p78_p7 = pnand %p77_p6, %p71_p3 }
   0xf   :  { %81 = shalt.err (!%p78_p7)
}
  0x10   :  { %18 = dma.hbm_to_vmem [thread:$0]  %s155_s0, 128, %s16_s10, [#allocation3]  }
  0x11   :  { %104 = dma.done.wait [#allocation3], 128  }
  0x12   :  { %105 = vsyncadd [#allocation3], 4294967168  ;;  %v24_v0 = vld [vmem:[#allocation2] sm:$0x3f]  ;;  %s109_s25 = smov [#allocation5]  }
  0x13   :  { %v56_v1 = vld [vmem:[%s156_s1] ss:$0 sm:$0xff]  ;;  %v55_v2 = vclamps-f32 %v24_v0, 0.999999  ;;  %v57_v3 = vld [vmem:[%s156_s1 + $0x1] ss:$0 sm:$0xff] }
  0x14   :  { %s46_s26 = sshll.u32 %s109_s25, 4  ;;  %s47_s26 = int_to_ptr.vmem [resolvable:$true] %s46_s26 }
  0x15   :  { %v33_v4 = vmul.f32 %v56_v1, %v55_v2  ;;  %s82_s27 = scalar_lea.vmem %s47_s26, 128  ;;  %p87_p9 = scmp.lt.s32.totalorder %s47_s26, %s47_s26 }
  0x16   :  { %p83_p8 = scmp.ne.s32.totalorder %s47_s26, %s82_s27  ;;  %p88_p10 = scmp.lt.s32.totalorder %s82_s27, %s82_s27 }
  0x17   :  { %v38_v5 = vadd.f32 %v57_v3, %v33_v4 }
  0x18   :  { %p89_p11 = por %p88_p10, %p87_p9 }
  0x19   :  { %39 = vst [vmem:[#allocation5] sm:$0x3f] %v38_v5 }
  0x1a   :  { %p90_p12 = pnand %p89_p11, %p83_p8 }
  0x1c   :  { %93 = shalt.err (!%p90_p12)
}
  0x1d   :  { %s94_s29 = scalar_lea.hbm %s157_s2, 128 }
  0x1e   :  { %p95_p13 = scmp.ne.s32.totalorder %s157_s2, %s94_s29  ;;  %p98_p0 = scmp.lt.u32.totalorder %s94_s29, %s157_s2 }
  0x20   :  { %p100_p1 = pnand %p98_p0, %p95_p13 }
  0x22   :  { %103 = shalt.err (!%p100_p1)
}
  0x23   :  { %49 = dma.vmem_to_hbm [thread:$0]  %s47_s26, 128, %s157_s2, [#allocation4]  }
  0x24   :  { %106 = dma.done.wait [#allocation4], 128  }
  0x25   :  { %107 = vsyncadd [#allocation4], 4294967168 }
  0x26   :  { %53 = vsyncpa [#allocation3], 1 }
  0x27   :  { %54 = vsyncpa [#allocation4], 1 }

</bundles_post_ra>
